<compile_context>
chip_gen: v6e
topology: v6e:2x2x1
jax: 0.10.0
libtpu: 0.0.40
codegen_flags: <defaults>
</compile_context>

<pallas_src>
import functools
import math

import jax
import jax.numpy as jnp
from jax import lax
from jax.experimental import pallas as pl
from jax.experimental.pallas import tpu as pltpu

EPS_DEFAULT = 1e-6


# ---------------------------------------------------------------------------
# Kernels
# ---------------------------------------------------------------------------
def _ln_channels_first_kernel(x_ref, w_ref, b_ref, o_ref, *, eps):
    # x_ref block: (bb, C, T) with T lane-dense (multiple of 128).
    x = x_ref[...].astype(jnp.float32)                # (bb, C, T)
    u = jnp.mean(x, axis=1, keepdims=True)            # (bb, 1, T) sublane reduce
    d = x - u
    s = jnp.mean(d * d, axis=1, keepdims=True)        # (bb, 1, T)
    inv = lax.rsqrt(s + eps)                          # EUP rsqrt (free slot)
    y = d * inv * w_ref[...] + b_ref[...]             # (1, C, 1) broadcast
    o_ref[...] = y.astype(o_ref.dtype)


def _ln_channels_last_kernel(x_ref, w_ref, b_ref, o_ref, *, eps, c_valid, c_padded):
    # x_ref block: (R, Cp); normalize over the trailing (channel) dim.
    x = x_ref[...].astype(jnp.float32)                # (R, Cp)
    if c_padded != c_valid:
        # Channel axis was zero-padded to a multiple of 128 in the wrapper:
        # zeros don't perturb the sum, but (x - u) must be masked for the var.
        lane = lax.broadcasted_iota(jnp.int32, x.shape, 1)
        mask = lane < c_valid
        inv_c = 1.0 / float(c_valid)
        u = jnp.sum(x, axis=-1, keepdims=True) * inv_c
        d = x - u
        dm = jnp.where(mask, d, 0.0)
        s = jnp.sum(dm * dm, axis=-1, keepdims=True) * inv_c
    else:
        u = jnp.mean(x, axis=-1, keepdims=True)
        d = x - u
        s = jnp.mean(d * d, axis=-1, keepdims=True)
    inv = lax.rsqrt(s + eps)
    o_ref[...] = (d * inv * w_ref[...] + b_ref[...]).astype(o_ref.dtype)


# ---------------------------------------------------------------------------
# VMEM budget + block-size helpers
# ---------------------------------------------------------------------------
def _round_up(n, m):
    return ((n + m - 1) // m) * m


def _vmem_limits():
    """(vmem_limit_bytes, per-step working-set budget), per TPU generation."""
    try:
        cap = int(pltpu.get_tpu_info().vmem_capacity_bytes)
    except Exception:
        cap = 64 * 1024 * 1024          # v7x-safe fallback
    vmem_limit = min((cap * 3) // 4, 96 * 1024 * 1024)   # 48 MiB v7x, 96 MiB v5e/v6e
    work_budget = vmem_limit // 2
    return vmem_limit, work_budget


def _largest_aligned_divisor(total, align, cap):
    """Largest multiple of `align` dividing `total` (a multiple of `align`), <= cap."""
    b = min(total, max(align, (cap // align) * align))
    b = max(align, (b // align) * align)
    while total % b:
        b -= align
    return b


# ---------------------------------------------------------------------------
# Wrappers
# ---------------------------------------------------------------------------
def layernorm_channels_first(x_nchw, weight, bias, *, eps=EPS_DEFAULT):
    """LayerNorm(data_format='channels_first') on an NCHW tensor."""
    B, C, H, W = x_nchw.shape
    HW = H * W
    x = x_nchw.reshape(B, C, HW)                      # pure reshape, no HBM transpose

    # Lane-dense spatial axis: pad HW to a multiple of 128 (stats are over C,
    # so padded lane columns are harmless and get sliced off afterwards).
    HWp = _round_up(HW, 128)
    if HWp != HW:
        x = jnp.pad(x, ((0, 0), (0, 0), (0, HWp - HW)))

    w3 = weight.reshape(1, C, 1).astype(jnp.float32)
    b3 = bias.reshape(1, C, 1).astype(jnp.float32)

    vmem_limit, budget = _vmem_limits()
    itemsize = jnp.dtype(x.dtype).itemsize
    # Working set per lane column per batch image:
    # 2x input + 2x output double-buffers (input dtype) + ~4 f32 temporaries.
    per_lane = C * (4 * itemsize + 4 * 4)
    lane_cap = min(32768, max(128, budget // max(per_lane, 1)))
    block_hw = _largest_aligned_divisor(HWp, 128, lane_cap)

    # Fold batch images into one grid step when a single step would be tiny
    # (amortize the ~0.35 us fixed per-step cost).
    bb = 1
    if block_hw == HWp and B > 1:
        step_in_bytes = C * HWp * itemsize
        target = 512 * 1024
        for cand in range(1, B + 1):
            if B % cand:
                continue
            if cand * HWp * per_lane > budget:
                break
            bb = cand
            if cand * step_in_bytes >= target:
                break

    # v7x has 2 TensorCores: keep >= 2 grid steps when the problem is big
    # enough that splitting is worthwhile.
    if bb == B and block_hw == HWp and B * C * HWp * itemsize >= (1 << 20):
        if B % 2 == 0 and B >= 2:
            bb = B // 2
        elif HWp % 256 == 0:
            block_hw = HWp // 2

    grid = (B // bb, HWp // block_hw)

    cost = pl.CostEstimate(
        flops=int(7 * B * C * HW),                    # mean/var/normalize/affine
        transcendentals=int(B * HW),                  # rsqrt per spatial position
        bytes_accessed=int(2 * B * C * HW * itemsize + 2 * C * 4),
    )

    out = pl.pallas_call(
        functools.partial(_ln_channels_first_kernel, eps=eps),
        out_shape=jax.ShapeDtypeStruct((B, C, HWp), x.dtype),
        grid_spec=pltpu.PrefetchScalarGridSpec(
            num_scalar_prefetch=0,
            grid=grid,
            in_specs=[
                pl.BlockSpec((bb, C, block_hw), lambda b, t: (b, 0, t)),
                pl.BlockSpec((1, C, 1), lambda b, t: (0, 0, 0)),
                pl.BlockSpec((1, C, 1), lambda b, t: (0, 0, 0)),
            ],
            out_specs=pl.BlockSpec((bb, C, block_hw), lambda b, t: (b, 0, t)),
        ),
        compiler_params=pltpu.CompilerParams(
            # Both axes independent -> shard across TCs on v7x; harmless on v5e/v6e.
            dimension_semantics=("parallel", "parallel"),
            vmem_limit_bytes=vmem_limit,
        ),
        cost_estimate=cost,
    )(x, w3, b3)

    if HWp != HW:
        out = out[:, :, :HW]
    return out.reshape(B, C, H, W)


def layernorm_channels_last(x, weight, bias, *, eps=EPS_DEFAULT):
    """LayerNorm(data_format='channels_last') on a (..., C) tensor."""
    orig_shape = x.shape
    C = orig_shape[-1]
    N = math.prod(orig_shape[:-1])
    x2 = x.reshape(N, C)

    # Lane-dense output: pad C to a multiple of 128 when the extra HBM
    # traffic is at most ~2x; for tiny C keep the full-extent lane dim
    # (padding inflation would cost more than masked stores).
    Cfull = _round_up(C, 128)
    pad_c = (C % 128 != 0) and (2 * C >= Cfull)
    Cp = Cfull if pad_c else C

    Nr = _round_up(N, 8)

    vmem_limit, budget = _vmem_limits()
    itemsize = jnp.dtype(x.dtype).itemsize
    per_row = Cp * (4 * itemsize + 4 * 4)
    row_cap = min(8192, max(8, budget // max(per_row, 1)))
    block_r = _largest_aligned_divisor(Nr, 8, row_cap)

    if Nr != N or Cp != C:
        x2 = jnp.pad(x2, ((0, Nr - N), (0, Cp - C)))
    w2 = jnp.pad(weight.astype(jnp.float32), (0, Cp - C)).reshape(1, Cp)
    b2 = jnp.pad(bias.astype(jnp.float32), (0, Cp - C)).reshape(1, Cp)

    grid = (Nr // block_r,)

    out = pl.pallas_call(
        functools.partial(_ln_channels_last_kernel, eps=eps,
                          c_valid=C, c_padded=Cp),
        out_shape=jax.ShapeDtypeStruct((Nr, Cp), x.dtype),
        grid_spec=pltpu.PrefetchScalarGridSpec(
            num_scalar_prefetch=0,
            grid=grid,
            in_specs=[
                pl.BlockSpec((block_r, Cp), lambda i: (i, 0)),
                pl.BlockSpec((1, Cp), lambda i: (0, 0)),
                pl.BlockSpec((1, Cp), lambda i: (0, 0)),
            ],
            out_specs=pl.BlockSpec((block_r, Cp), lambda i: (i, 0)),
        ),
        compiler_params=pltpu.CompilerParams(
            dimension_semantics=("parallel",),
            vmem_limit_bytes=vmem_limit,
        ),
    )(x2, w2, b2)

    out = out[:N, :C]
    return out.reshape(orig_shape)


# ---------------------------------------------------------------------------
# Pure-JAX references mirroring the PyTorch module
# ---------------------------------------------------------------------------
def _ref_channels_first(x, w, b, eps=EPS_DEFAULT):
    u = x.mean(1, keepdims=True)
    s = ((x - u) ** 2).mean(1, keepdims=True)
    xn = (x - u) / jnp.sqrt(s + eps)
    return w[None, :, None, None] * xn + b[None, :, None, None]


def _ref_channels_last(x, w, b, eps=EPS_DEFAULT):
    u = x.mean(-1, keepdims=True)
    s = ((x - u) ** 2).mean(-1, keepdims=True)
    return (x - u) / jnp.sqrt(s + eps) * w + b


# ---------------------------------------------------------------------------
if __name__ == "__main__":
    key = jax.random.PRNGKey(0)
    kx, kw, kb, kx2, kw2, kb2 = jax.random.split(key, 6)

    # --- channels_first (the variant used by ConvMod / convmod_attention.py)
    B, C, H, W = 2, 4, 16, 16
    x = jax.random.normal(kx, (B, C, H, W), jnp.float32)
    weight = 1.0 + 0.5 * jax.random.normal(kw, (C,), jnp.float32)
    bias = 0.1 * jax.random.normal(kb, (C,), jnp.float32)

    out_cf = jax.block_until_ready(layernorm_channels_first(x, weight, bias))
    ref_cf = _ref_channels_first(x, weight, bias)
    assert out_cf.shape == (B, C, H, W)
    assert jnp.allclose(out_cf, ref_cf, atol=1e-4, rtol=1e-4), (
        float(jnp.max(jnp.abs(out_cf - ref_cf))))

    # --- channels_first, non-128-aligned spatial extent (exercises padding)
    x_odd = jax.random.normal(kx2, (B, C, 10, 10), jnp.float32)
    out_odd = jax.block_until_ready(layernorm_channels_first(x_odd, weight, bias))
    ref_odd = _ref_channels_first(x_odd, weight, bias)
    assert jnp.allclose(out_odd, ref_odd, atol=1e-4, rtol=1e-4), (
        float(jnp.max(jnp.abs(out_odd - ref_odd))))

    # --- channels_last branch of the module (tiny C: unpadded lane dim)
    x_cl = jnp.transpose(x, (0, 2, 3, 1))
    out_cl = jax.block_until_ready(layernorm_channels_last(x_cl, weight, bias))
    ref_cl = _ref_channels_last(x_cl, weight, bias)
    assert jnp.allclose(out_cl, ref_cl, atol=1e-4, rtol=1e-4), (
        float(jnp.max(jnp.abs(out_cl - ref_cl))))

    # --- channels_last with C=96 (exercises lane padding + masked variance)
    C2 = 96
    x_cl2 = jax.random.normal(kx2, (2, 8, 8, C2), jnp.float32)
    w_cl2 = 1.0 + 0.5 * jax.random.normal(kw2, (C2,), jnp.float32)
    b_cl2 = 0.1 * jax.random.normal(kb2, (C2,), jnp.float32)
    out_cl2 = jax.block_until_ready(layernorm_channels_last(x_cl2, w_cl2, b_cl2))
    ref_cl2 = _ref_channels_last(x_cl2, w_cl2, b_cl2)
    assert jnp.allclose(out_cl2, ref_cl2, atol=1e-4, rtol=1e-4), (
        float(jnp.max(jnp.abs(out_cl2 - ref_cl2))))

    print("KERNEL_OK")
</pallas_src>

<mosaic_0001>
module attributes {stable_mosaic.version = 11 : i64} {
  func.func @_ln_channels_first_kernel(%arg0: i32, %arg1: i32, %arg2: memref<2x4x256xf32, #tpu.memory_space<vmem>>, %arg3: memref<1x4x1xf32, #tpu.memory_space<vmem>>, %arg4: memref<1x4x1xf32, #tpu.memory_space<vmem>>, %arg5: memref<2x4x256xf32, #tpu.memory_space<vmem>>) attributes {dimension_semantics = [#tpu.dimension_semantics<parallel>, #tpu.dimension_semantics<parallel>], iteration_bounds = array<i64: 1, 1>, scalar_prefetch = 0 : i64, scratch_operands = 0 : i64, tpu.core_type = #tpu.core_type<tc>, window_params = [{transform_indices = @transform_0, window_bounds = array<i64: 2, 4, 256>}, {pipeline_mode = #tpu.pipeline_mode<synchronous>, transform_indices = @transform_1, window_bounds = array<i64: 1, 4, 1>}, {pipeline_mode = #tpu.pipeline_mode<synchronous>, transform_indices = @transform_2, window_bounds = array<i64: 1, 4, 1>}, {transform_indices = @transform_3, window_bounds = array<i64: 2, 4, 256>}]} {
    %c0 = arith.constant 0 : index
    %c0_0 = arith.constant 0 : index
    %c0_1 = arith.constant 0 : index
    %0 = vector.load %arg2[%c0, %c0_0, %c0_1] : memref<2x4x256xf32, #tpu.memory_space<vmem>>, vector<2x4x256xf32>
    %cst = arith.constant dense<0.000000e+00> : vector<2x256xf32>
    %1 = vector.multi_reduction <add>, %0, %cst [1] : vector<2x4x256xf32> to vector<2x256xf32>
    %2 = vector.shape_cast %1 : vector<2x256xf32> to vector<2x1x256xf32>
    %cst_2 = arith.constant 4.000000e+00 : f32
    %3 = vector.broadcast %cst_2 : f32 to vector<2x1x256xf32>
    %4 = arith.divf %2, %3 : vector<2x1x256xf32>
    %5 = vector.broadcast %4 : vector<2x1x256xf32> to vector<2x4x256xf32>
    %6 = arith.subf %0, %5 : vector<2x4x256xf32>
    %7 = arith.mulf %6, %6 : vector<2x4x256xf32>
    %cst_3 = arith.constant dense<0.000000e+00> : vector<2x256xf32>
    %8 = vector.multi_reduction <add>, %7, %cst_3 [1] : vector<2x4x256xf32> to vector<2x256xf32>
    %9 = vector.shape_cast %8 : vector<2x256xf32> to vector<2x1x256xf32>
    %cst_4 = arith.constant 4.000000e+00 : f32
    %10 = vector.broadcast %cst_4 : f32 to vector<2x1x256xf32>
    %11 = arith.divf %9, %10 : vector<2x1x256xf32>
    %cst_5 = arith.constant 9.99999997E-7 : f32
    %12 = vector.broadcast %cst_5 : f32 to vector<2x1x256xf32>
    %13 = arith.addf %11, %12 : vector<2x1x256xf32>
    %14 = math.rsqrt %13 : vector<2x1x256xf32>
    %15 = vector.broadcast %14 : vector<2x1x256xf32> to vector<2x4x256xf32>
    %16 = arith.mulf %6, %15 : vector<2x4x256xf32>
    %c0_6 = arith.constant 0 : index
    %c0_7 = arith.constant 0 : index
    %c0_8 = arith.constant 0 : index
    %17 = vector.load %arg3[%c0_6, %c0_7, %c0_8] : memref<1x4x1xf32, #tpu.memory_space<vmem>>, vector<1x4x1xf32>
    %18 = vector.broadcast %17 : vector<1x4x1xf32> to vector<2x4x256xf32>
    %19 = arith.mulf %16, %18 : vector<2x4x256xf32>
    %c0_9 = arith.constant 0 : index
    %c0_10 = arith.constant 0 : index
    %c0_11 = arith.constant 0 : index
    %20 = vector.load %arg4[%c0_9, %c0_10, %c0_11] : memref<1x4x1xf32, #tpu.memory_space<vmem>>, vector<1x4x1xf32>
    %21 = vector.broadcast %20 : vector<1x4x1xf32> to vector<2x4x256xf32>
    %22 = arith.addf %19, %21 : vector<2x4x256xf32>
    %c0_12 = arith.constant 0 : index
    %c0_13 = arith.constant 0 : index
    %c0_14 = arith.constant 0 : index
    %23 = vector.load %arg5[%c0_12, %c0_13, %c0_14] : memref<2x4x256xf32, #tpu.memory_space<vmem>>, vector<2x4x256xf32>
    tpu.vector_store %arg5[%c0_12, %c0_13, %c0_14], %22 {strides = array<i32>} : memref<2x4x256xf32, #tpu.memory_space<vmem>>, vector<2x4x256xf32>,
    return
  }
  func.func @transform_0(%arg0: i32, %arg1: i32) -> (i32, i32, i32) {
    %c0_i32 = arith.constant 0 : i32
    %c0_i32_0 = arith.constant 0 : i32
    return %arg0, %c0_i32, %arg1 : i32, i32, i32
  }
  func.func @transform_1(%arg0: i32, %arg1: i32) -> (i32, i32, i32) {
    %c0_i32 = arith.constant 0 : i32
    %c0_i32_0 = arith.constant 0 : i32
    %c0_i32_1 = arith.constant 0 : i32
    %c0_i32_2 = arith.constant 0 : i32
    return %c0_i32, %c0_i32_0, %c0_i32_1 : i32, i32, i32
  }
  func.func @transform_2(%arg0: i32, %arg1: i32) -> (i32, i32, i32) {
    %c0_i32 = arith.constant 0 : i32
    %c0_i32_0 = arith.constant 0 : i32
    %c0_i32_1 = arith.constant 0 : i32
    %c0_i32_2 = arith.constant 0 : i32
    return %c0_i32, %c0_i32_0, %c0_i32_1 : i32, i32, i32
  }
  func.func @transform_3(%arg0: i32, %arg1: i32) -> (i32, i32, i32) {
    %c0_i32 = arith.constant 0 : i32
    %c0_i32_0 = arith.constant 0 : i32
    return %arg0, %c0_i32, %arg1 : i32, i32, i32
  }
}

</mosaic_0001>

<bundles_post_ra>
// kernel: tpu_custom_call.1
= control target key start
LH: loop header
LB: loop body
LE: loop exit
PB: predicated region body
PF: predicated region fallthrough
CT: control target
= control target key end

     0   :  { %8 = vsyncpa [#allocation3], 0  ;;  %s301_s0 = inlined_call_operand.hbm [shape: f32[2,4,256], index: 0, kind: input, shape index: {}]   ;;  %s302_s1 = inlined_call_operand.vmem [shape: f32[1,4,1], index: 1, kind: input, shape index: {}]   ;;  %s303_s2 = inlined_call_operand.vmem [shape: f32[1,4,1], index: 2, kind: input, shape index: {}]   ;;  %s304_s3 = inlined_call_operand.hbm [shape: f32[2,4,256], index: 3, kind: output, shape index: {}]  }
   0x1   :  { %9 = vsyncpa [#allocation4], 0  ;;  %s249_s12 = smov [#allocation2]  }
   0x2   :  { %s15_s13 = sshll.u32 %s249_s12, 4  ;;  %s16_s13 = int_to_ptr.vmem [resolvable:$true] %s15_s13 }
   0x3   :  { %s213_s14 = scalar_lea.vmem %s16_s13, 256  ;;  %p218_p1 = scmp.lt.s32.totalorder %s16_s13, %s16_s13 }
   0x4   :  { %p214_p0 = scmp.ne.s32.totalorder %s16_s13, %s213_s14  ;;  %p219_p2 = scmp.lt.s32.totalorder %s213_s14, %s213_s14 }
   0x6   :  { %p220_p3 = por %p219_p2, %p218_p1 }
   0x8   :  { %p221_p4 = pnand %p220_p3, %p214_p0 }
   0xa   :  { %224 = shalt.err (!%p221_p4)
}
   0xb   :  { %s250_s15 = smov 128   ;;  %s251_s16 = smov 8  }
   0xc   :  { %21 = dma.hbm_to_vmem [thread:$0]  %s301_s0, 256, %s16_s13, [#allocation3], %s250_s15, %s250_s15, %s251_s16  }
   0xd   :  { %245 = dma.done.wait [#allocation3], 256  }
   0xe   :  { %246 = vsyncadd [#allocation3], 4294967040  ;;  %v252_v0 = vmov 0   ;;  %v139_v1 = vld [vmem:[%s302_s1] sm:$0xf]  ;;  %v30_v4 = vld [vmem:[#allocation2 + $0x8] sm:$0xff] }
   0xf   :  { %194 = vset.pattern.permute.xlu0 %v252_v0  ;;  %v154_v2 = vld [vmem:[%s303_s2] sm:$0xf]  ;;  %vm37_vm0 = vcmask 1043456   ;;  %v34_v6 = vcombine.high %v30_v4, %v30_v4  ;;  %s254_s0 = smov [#allocation5]  }
  0x10   :  { %142 = vperm.xlu0 %194, %v139_v1   ;;  %v29_v3 = vld [vmem:[#allocation2] sm:$0xff]  ;;  %v52_v9 = vsel %vm37_vm0, %v30_v4, 0.0  ;;  %s176_s1 = sshll.u32 %s254_s0, 4  ;;  %s177_s1 = int_to_ptr.vmem [resolvable:$true] %s176_s1 }
  0x11   :  { %v33_v5 = vcombine.high %v29_v3, %v29_v3  ;;  %v38_v7 = vsel %vm37_vm0, %v29_v3, 0.0  ;;  %v59_v10 = vsel %vm37_vm0, %v34_v6, 0.0  ;;  %v53_v13 = vrot.slane %v52_v9, 4  ;;  %s225_s2 = scalar_lea.vmem %s177_s1, 256  ;;  %p230_p6 = scmp.lt.s32.totalorder %s177_s1, %s177_s1 }
  0x12   :  { %v39_v11 = vrot.slane %v38_v7, 4  ;;  %v60_v14 = vrot.slane %v59_v10, 4  ;;  %p226_p5 = scmp.ne.s32.totalorder %s177_s1, %s225_s2  ;;  %p231_p7 = scmp.lt.s32.totalorder %s225_s2, %s225_s2 }
  0x13   :  { %v45_v8 = vsel %vm37_vm0, %v33_v5, 0.0  ;;  %v54_v17 = vadd.f32 %v53_v13, %v52_v9 }
  0x14   :  { %157 = vperm.xlu0 %194, %v154_v2   ;;  %v46_v12 = vrot.slane %v45_v8, 4  ;;  %v40_v15 = vadd.f32 %v39_v11, %v38_v7  ;;  %v61_v18 = vadd.f32 %v60_v14, %v59_v10  ;;  %p232_p8 = por %p231_p7, %p230_p6 }
  0x15   :  { %v55_v21 = vrot.slane %v54_v17, 2 }
  0x16   :  { %v47_v16 = vadd.f32 %v46_v12, %v45_v8  ;;  %v41_v19 = vrot.slane %v40_v15, 2  ;;  %v62_v22 = vrot.slane %v61_v18, 2  ;;  %p233_p9 = pnand %p232_p8, %p226_p5 }
  0x17   :  { %v56_v25 = vadd.f32 %v55_v21, %v54_v17  ;;  %v147_v21 = vlaneseq }
  0x18   :  { %v48_v20 = vrot.slane %v47_v16, 2  ;;  %v42_v23 = vadd.f32 %v41_v19, %v40_v15  ;;  %v63_v26 = vadd.f32 %v62_v22, %v61_v18  ;;  %v253_v19 = vmov 839922192  }
  0x19   :  { %v57_v29 = vrot.slane %v56_v25, 1 }
  0x1a   :  { %v49_v24 = vadd.f32 %v48_v20, %v47_v16  ;;  %v43_v27 = vrot.slane %v42_v23, 1  ;;  %v64_v30 = vrot.slane %v63_v26, 1  ;;  %v145_v20 = vunpack.c.l.s4 %v253_v19 }
  0x1b   :  { %v58_v33 = vadd.f32 %v57_v29, %v56_v25 }
  0x1c   :  { %v50_v28 = vrot.slane %v49_v24, 1  ;;  %v44_v31 = vadd.f32 %v43_v27, %v42_v23  ;;  %v65_v34 = vadd.f32 %v64_v30, %v63_v26  ;;  %v146_v25 = vunpack.c.0.s8 %v145_v20 }
  0x1d   :  { %v69_v37 = vmul.f32 0.25, %v58_v33  ;;  %v148_v26 = vshrl.u32 %v147_v21, 7 }
  0x1e   :  { %v51_v32 = vadd.f32 %v50_v28, %v49_v24  ;;  %v67_v35 = vmul.f32 0.25, %v44_v31  ;;  %v70_v38 = vmul.f32 0.25, %v65_v34 }
  0x1f   :  { %v149_v28 = vsub.s32 %v146_v25, %v148_v26 }
  0x20   :  { %v68_v36 = vmul.f32 0.25, %v51_v32  ;;  %v76_v40 = vcombine.low %v69_v37, %v70_v38 }
  0x22   :  { %v75_v39 = vcombine.low %v67_v35, %v68_v36  ;;  %v80_v42 = vsub.f32 %v30_v4, %v76_v40 }
  0x24   :  { %v79_v41 = vsub.f32 %v29_v3, %v75_v39  ;;  %v82_v44 = vmul.f32 %v80_v42, %v80_v42 }
  0x26   :  { %v81_v43 = vmul.f32 %v79_v41, %v79_v41  ;;  %v86_v46 = vcombine.high %v82_v44, %v82_v44  ;;  %v103_v48 = vsel %vm37_vm0, %v82_v44, 0.0 }
  0x27   :  { %v104_v52 = vrot.slane %v103_v48, 4 }
  0x28   :  { %v85_v45 = vcombine.high %v81_v43, %v81_v43  ;;  %v89_v47 = vsel %vm37_vm0, %v81_v43, 0.0  ;;  %v110_v51 = vsel %vm37_vm0, %v86_v46, 0.0 }
  0x29   :  { %v90_v50 = vrot.slane %v89_v47, 4  ;;  %v111_v54 = vrot.slane %v110_v51, 4  ;;  %v105_v56 = vadd.f32 %v104_v52, %v103_v48 }
  0x2a   :  { %v96_v49 = vsel %vm37_vm0, %v85_v45, 0.0 }
  0x2b   :  { %v97_v53 = vrot.slane %v96_v49, 4  ;;  %v91_v55 = vadd.f32 %v90_v50, %v89_v47  ;;  %v112_v58 = vadd.f32 %v111_v54, %v110_v51  ;;  %v106_v60 = vrot.slane %v105_v56, 2 }
  0x2d   :  { %v98_v57 = vadd.f32 %v97_v53, %v96_v49  ;;  %v92_v59 = vrot.slane %v91_v55, 2  ;;  %v113_v62 = vrot.slane %v112_v58, 2  ;;  %v107_v0 = vadd.f32 %v106_v60, %v105_v56 }
  0x2f   :  { %v99_v61 = vrot.slane %v98_v57, 2  ;;  %v93_v63 = vadd.f32 %v92_v59, %v91_v55  ;;  %v114_v2 = vadd.f32 %v113_v62, %v112_v58  ;;  %v108_v4 = vrot.slane %v107_v0, 1 }
  0x31   :  { %v100_v1 = vadd.f32 %v99_v61, %v98_v57  ;;  %v94_v3 = vrot.slane %v93_v63, 1  ;;  %v115_v6 = vrot.slane %v114_v2, 1  ;;  %v109_v8 = vadd.f32 %v108_v4, %v107_v0 }
  0x33   :  { %v101_v5 = vrot.slane %v100_v1, 1  ;;  %v95_v7 = vadd.f32 %v94_v3, %v93_v63  ;;  %v116_v10 = vadd.f32 %v115_v6, %v114_v2  ;;  %v119_v12 = vmul.f32 0.25, %v109_v8 }
  0x35   :  { %v102_v9 = vadd.f32 %v101_v5, %v100_v1  ;;  %v117_v11 = vmul.f32 0.25, %v95_v7  ;;  %v120_v14 = vmul.f32 0.25, %v116_v10  ;;  %v123_v16 = vadd.f32 1e-06, %v119_v12 }
  0x37   :  { %v118_v13 = vmul.f32 0.25, %v102_v9  ;;  %v121_v15 = vadd.f32 1e-06, %v117_v11  ;;  %v124_v18 = vadd.f32 1e-06, %v120_v14 }
  0x39   :  { %v122_v17 = vadd.f32 1e-06, %v118_v13  ;;  %197 = vrsqrt.f32 %v121_v15 }
  0x3a   :  { %199 = vrsqrt.f32 %v123_v16 }
  0x3b   :  { %201 = vrsqrt.f32 %v122_v17 }
  0x3c   :  { %203 = vrsqrt.f32 %v124_v18 }
  0x46   :  { %v198_v22 = vpop.eup %197 }
  0x47   :  { %v200_v23 = vpop.eup %199 }
  0x48   :  { %v202_v24 = vpop.eup %201 }
  0x49   :  { %v204_v27 = vpop.eup %203  ;;  %v133_v29 = vcombine.low %v198_v22, %v202_v24 }
  0x4a   :  { %v134_v30 = vcombine.low %v200_v23, %v204_v27 }
  0x4b   :  { %v137_v32 = vmul.f32 %v133_v29, %v79_v41 }
  0x4c   :  { %v138_v33 = vmul.f32 %v134_v30, %v80_v42 }
  0x8b   :  { %v143_v31 = vpop.permute.xlu0 %142 }
  0x8c   :  { %v150_v34 = vrot.slane %v143_v31, %v149_v28 }
  0x8e   :  { %v152_v36 = vmul.f32 %v150_v34, %v137_v32  ;;  %v153_v37 = vmul.f32 %v150_v34, %v138_v33 }
  0x8f   :  { %v158_v35 = vpop.permute.xlu0 %157 }
  0x90   :  { %v165_v38 = vrot.slane %v158_v35, %v149_v28 }
  0x92   :  { %v167_v39 = vadd.f32 %v165_v38, %v152_v36  ;;  %v168_v40 = vadd.f32 %v165_v38, %v153_v37 }
  0x94   :  { %169 = vst [vmem:[#allocation5] sm:$0xff] %v167_v39  ;;  %170 = vst [vmem:[#allocation5 + $0x8] sm:$0xff] %v168_v40 }
  0x95   :  { %236 = shalt.err (!%p233_p9)
}
  0x96   :  { %182 = dma.vmem_to_hbm [thread:$0]  %s177_s1, 256, %s304_s3, [#allocation4], %s250_s15, %s250_s15, %s251_s16  }
  0x97   :  { %247 = dma.done.wait [#allocation4], 256  }
  0x98   :  { %248 = vsyncadd [#allocation4], 4294967040 }
  0x99   :  { %186 = vsyncpa [#allocation3], 1 }
  0x9a   :  { %187 = vsyncpa [#allocation4], 1 }

</bundles_post_ra>
